<compile_context>
chip_gen: v7x
topology: tpu7x:2x2x1
jax: 0.10.0
libtpu: 0.0.40
codegen_flags: <defaults>
</compile_context>

<pallas_src>
import functools

import jax
import jax.numpy as jnp
from jax.experimental import pallas as pl
from jax.experimental.pallas import tpu as pltpu

HIDDEN = 512
BN_EPS = 1e-5
LANE = 128
TB_ALIGN = 16            # bf16-friendly sublane multiple (also satisfies (8,128) rule)
DEF_BATCH_TILE = 512
DEF_K_TILE = 2048        # streams W1 in (TK, 512) slabs -> VMEM bounded for any n_inputs


def _round_up(v, m):
    return (v + m - 1) // m * m


def _vmem_limit_bytes():
    # ~3/4 of physical VMEM: ~96 MiB on v5e/v6e (128 MiB), ~48 MiB on v7x (64 MiB).
    try:
        cap = pltpu.get_tpu_info().vmem_capacity_bytes
    except Exception:
        cap = 64 * 1024 * 1024
    return min(int(cap) * 3 // 4, 96 * 1024 * 1024)


# --------------------------------------------------------------------------- #
# Call 1: h = x @ W1 (K-tiled), cache h (bf16) to HBM, accumulate batch stats. #
# --------------------------------------------------------------------------- #
def _stats_kernel(x_ref, w1_ref, h_ref, sum_ref, sumsq_ref, hacc_ref):
    b = pl.program_id(0)        # batch tile
    k = pl.program_id(1)        # K tile (reduction axis, last in grid)
    nk = pl.num_programs(1)

    @pl.when((b == 0) & (k == 0))
    def _():
        sum_ref[...] = jnp.zeros_like(sum_ref)
        sumsq_ref[...] = jnp.zeros_like(sumsq_ref)

    @pl.when(k == 0)
    def _():
        hacc_ref[...] = jnp.zeros_like(hacc_ref)

    # bf16 MXU operands, f32 accumulation. x may arrive f32 (no-pad fast path).
    hacc_ref[...] += jnp.dot(x_ref[...].astype(jnp.bfloat16), w1_ref[...],
                             preferred_element_type=jnp.float32)

    @pl.when(k == nk - 1)
    def _():
        h = hacc_ref[...]
        h_ref[...] = h.astype(h_ref.dtype)                       # cache h for call 2
        sum_ref[...] += jnp.sum(h, axis=0, keepdims=True)
        sumsq_ref[...] += jnp.sum(h * h, axis=0, keepdims=True)


# --------------------------------------------------------------------------- #
# Call 2: folded BN + ReLU + second Linear (batch tiles independent/parallel). #
# --------------------------------------------------------------------------- #
def _apply_kernel(ss_ref, h_ref, w2_ref, b2_ref, o_ref):
    ss = ss_ref[...]                                             # (2,512): scale / shift
    a = jnp.maximum(h_ref[...].astype(jnp.float32) * ss[0:1, :] + ss[1:2, :], 0.0)
    out = jnp.dot(a.astype(jnp.bfloat16), w2_ref[...],
                  preferred_element_type=jnp.float32) + b2_ref[...]
    o_ref[...] = out.astype(o_ref.dtype)


def multilab_class_forward(x, params, *, batch_tile=DEF_BATCH_TILE, k_tile=DEF_K_TILE):
    """x: (B, n_inputs) float32.  params: dict with pre-transposed (in, out) weights."""
    B, n_inputs = x.shape
    n_cond_in = params["w2"].shape[1]

    # ---- tile / padding geometry (minimize padded waste) -------------------
    K_pad = _round_up(n_inputs, LANE)
    N_pad = _round_up(n_cond_in, LANE)

    nk = -(-K_pad // max(k_tile, LANE))
    TK = _round_up(-(-K_pad // nk), LANE)
    K_pad = TK * nk

    nb = -(-B // max(batch_tile, TB_ALIGN))
    TB = _round_up(-(-B // nb), TB_ALIGN)
    B_pad = TB * nb

    # ---- operand preparation ------------------------------------------------
    needs_pad = (B_pad != B) or (K_pad != n_inputs)
    if needs_pad:
        # Zero-padded rows produce h == 0 exactly (no bias in-kernel), so the
        # batch statistics only need the true-B divisor.
        x_in = jnp.pad(x, ((0, B_pad - B), (0, K_pad - n_inputs))).astype(jnp.bfloat16)
    else:
        x_in = x    # keep f32, cast in-kernel: avoids a standalone pad/cast HBM pass

    w1 = jnp.pad(params["w1"], ((0, K_pad - n_inputs), (0, 0))).astype(jnp.bfloat16)
    w2 = jnp.pad(params["w2"], ((0, 0), (0, N_pad - n_cond_in))).astype(jnp.bfloat16)
    b2 = jnp.pad(params["b2"].reshape(1, n_cond_in),
                 ((0, 0), (0, N_pad - n_cond_in))).astype(jnp.float32)
    # params["b1"] intentionally unused: cancelled exactly by batch-stat BatchNorm.

    vmem_limit = _vmem_limit_bytes()
    x_bytes = x_in.size * jnp.dtype(x_in.dtype).itemsize

    # ---- call 1: first matmul + batch stats, h cached to HBM ---------------
    h_bf16, h_sum, h_sumsq = pl.pallas_call(
        _stats_kernel,
        out_shape=(
            jax.ShapeDtypeStruct((B_pad, HIDDEN), jnp.bfloat16),   # cached h
            jax.ShapeDtypeStruct((1, HIDDEN), jnp.float32),        # sum(h)
            jax.ShapeDtypeStruct((1, HIDDEN), jnp.float32),        # sum(h*h)
        ),
        grid=(nb, nk),
        in_specs=[
            pl.BlockSpec((TB, TK), lambda b, k: (b, k)),           # x tile
            pl.BlockSpec((TK, HIDDEN), lambda b, k: (k, 0)),       # W1 slab
        ],
        out_specs=(
            pl.BlockSpec((TB, HIDDEN), lambda b, k: (b, 0)),       # h tile (written at k last)
            pl.BlockSpec((1, HIDDEN), lambda b, k: (0, 0)),        # resident accumulator
            pl.BlockSpec((1, HIDDEN), lambda b, k: (0, 0)),        # resident accumulator
        ),
        scratch_shapes=[pltpu.VMEM((TB, HIDDEN), jnp.float32)],    # f32 h accumulator
        compiler_params=pltpu.CompilerParams(
            dimension_semantics=("arbitrary", "arbitrary"),        # both axes carry reductions
            vmem_limit_bytes=vmem_limit,
        ),
        cost_estimate=pl.CostEstimate(
            flops=2 * B_pad * K_pad * HIDDEN + 3 * B_pad * HIDDEN,
            transcendentals=0,
            bytes_accessed=x_bytes + w1.size * 2 + B_pad * HIDDEN * 2 + 2 * HIDDEN * 4,
        ),
    )(x_in, w1)

    # ---- BN fold, computed once in the wrapper (tiny (2,512) XLA op) -------
    inv_b = 1.0 / float(B)
    mean = h_sum[0] * inv_b
    var = jnp.maximum(h_sumsq[0] * inv_b - mean * mean, 0.0)      # cancellation guard
    scale = params["gamma"].astype(jnp.float32) * jax.lax.rsqrt(var + BN_EPS)
    shift = params["beta"].astype(jnp.float32) - mean * scale
    ss = jnp.stack([scale, shift], axis=0)                        # (2, 512)

    # ---- call 2: BN apply + ReLU + second matmul (parallel over batch) -----
    out = pl.pallas_call(
        _apply_kernel,
        out_shape=jax.ShapeDtypeStruct((B_pad, N_pad), jnp.float32),
        grid=(nb,),
        in_specs=[
            pl.BlockSpec((2, HIDDEN), lambda b: (0, 0)),           # scale/shift packed
            pl.BlockSpec((TB, HIDDEN), lambda b: (b, 0)),          # cached h tile
            pl.BlockSpec((HIDDEN, N_pad), lambda b: (0, 0)),       # W2 (resident)
            pl.BlockSpec((1, N_pad), lambda b: (0, 0)),            # b2
        ],
        out_specs=pl.BlockSpec((TB, N_pad), lambda b: (b, 0)),
        compiler_params=pltpu.CompilerParams(
            dimension_semantics=("parallel",),                     # v7x: shard across 2 TCs
            vmem_limit_bytes=vmem_limit,
        ),
        cost_estimate=pl.CostEstimate(
            flops=2 * B_pad * HIDDEN * N_pad + 3 * B_pad * HIDDEN,
            transcendentals=0,
            bytes_accessed=(B_pad * HIDDEN * 2 + HIDDEN * N_pad * 2
                            + B_pad * N_pad * 4 + (2 * HIDDEN + N_pad) * 4),
        ),
    )(ss, h_bf16, w2, b2)

    return out[:B, :n_cond_in]


def init_params(key, n_inputs, n_cond_in):
    """Deterministic synthetic init (PyTorch-like uniform fan-in scaling)."""
    k1, k2, k3, k4 = jax.random.split(key, 4)
    lim1 = 1.0 / jnp.sqrt(n_inputs)
    lim2 = 1.0 / jnp.sqrt(HIDDEN)
    return {
        # stored pre-transposed: (in, out)
        "w1": jax.random.uniform(k1, (n_inputs, HIDDEN), jnp.float32, -lim1, lim1),
        "b1": jax.random.uniform(k2, (HIDDEN,), jnp.float32, -lim1, lim1),
        "gamma": jnp.ones((HIDDEN,), jnp.float32),
        "beta": jnp.zeros((HIDDEN,), jnp.float32),
        "w2": jax.random.uniform(k3, (HIDDEN, n_cond_in), jnp.float32, -lim2, lim2),
        "b2": jax.random.uniform(k4, (n_cond_in,), jnp.float32, -lim2, lim2),
    }


def _reference(x, p):
    """Pure-f32 reference matching the PyTorch module in training mode."""
    h = x @ p["w1"] + p["b1"]
    mean = h.mean(0, keepdims=True)
    var = ((h - mean) ** 2).mean(0, keepdims=True)
    h = (h - mean) / jnp.sqrt(var + BN_EPS) * p["gamma"] + p["beta"]
    h = jnp.maximum(h, 0.0)
    return h @ p["w2"] + p["b2"]


if __name__ == "__main__":
    B, n_inputs, n_cond_in = 8, 32, 16

    key = jax.random.PRNGKey(0)
    kx, kp = jax.random.split(key)
    x = jax.random.normal(kx, (B, n_inputs), jnp.float32)
    params = init_params(kp, n_inputs, n_cond_in)

    out = multilab_class_forward(x, params)
    out = jax.block_until_ready(out)

    ref = _reference(x, params)
    assert out.shape == (B, n_cond_in)
    # Tolerance accounts for bf16 MXU operands / bf16-cached h (stats & accumulation stay f32).
    err = float(jnp.max(jnp.abs(out - ref)))
    assert jnp.allclose(out, ref, atol=5e-2, rtol=5e-2), f"mismatch vs reference (max abs err {err})"

    print("KERNEL_OK")
</pallas_src>

<mosaic_0001>
module attributes {stable_mosaic.version = 11 : i64} {
  func.func @_stats_kernel(%arg0: i32, %arg1: i32, %arg2: memref<16x128xbf16, #tpu.memory_space<vmem>>, %arg3: memref<128x512xbf16, #tpu.memory_space<vmem>>, %arg4: memref<16x512xbf16, #tpu.memory_space<vmem>>, %arg5: memref<1x512xf32, #tpu.memory_space<vmem>>, %arg6: memref<1x512xf32, #tpu.memory_space<vmem>>, %arg7: memref<16x512xf32, #tpu.memory_space<vmem>>) attributes {dimension_semantics = [#tpu.dimension_semantics<arbitrary>, #tpu.dimension_semantics<arbitrary>], iteration_bounds = array<i64: 1, 1>, scalar_prefetch = 0 : i64, scratch_operands = 1 : i64, tpu.core_type = #tpu.core_type<tc>, window_params = [{transform_indices = @transform_0, window_bounds = array<i64: 16, 128>}, {transform_indices = @transform_1, window_bounds = array<i64: 128, 512>}, {transform_indices = @transform_2, window_bounds = array<i64: 16, 512>}, {pipeline_mode = #tpu.pipeline_mode<synchronous>, transform_indices = @transform_3, window_bounds = array<i64: 1, 512>}, {pipeline_mode = #tpu.pipeline_mode<synchronous>, transform_indices = @transform_4, window_bounds = array<i64: 1, 512>}]} {
    %c0_i32 = arith.constant 0 : i32
    %0 = arith.cmpi eq, %arg0, %c0_i32 : i32
    %c0_i32_0 = arith.constant 0 : i32
    %1 = arith.cmpi eq, %arg1, %c0_i32_0 : i32
    %2 = arith.andi %0, %1 : i1
    %3 = arith.extui %2 : i1 to i32
    %c0_i32_1 = arith.constant 0 : i32
    %4 = arith.cmpi ne, %3, %c0_i32_1 : i32
    scf.if %4 {
      %cst_13 = arith.constant 0.000000e+00 : f32
      %17 = vector.broadcast %cst_13 : f32 to vector<1x512xf32>
      %c0_14 = arith.constant 0 : index
      %c0_15 = arith.constant 0 : index
      %18 = vector.load %arg5[%c0_14, %c0_15] : memref<1x512xf32, #tpu.memory_space<vmem>>, vector<1x512xf32>
      tpu.vector_store %arg5[%c0_14, %c0_15], %17 {strides = array<i32>} : memref<1x512xf32, #tpu.memory_space<vmem>>, vector<1x512xf32>,
      %cst_16 = arith.constant 0.000000e+00 : f32
      %19 = vector.broadcast %cst_16 : f32 to vector<1x512xf32>
      %c0_17 = arith.constant 0 : index
      %c0_18 = arith.constant 0 : index
      %20 = vector.load %arg6[%c0_17, %c0_18] : memref<1x512xf32, #tpu.memory_space<vmem>>, vector<1x512xf32>
      tpu.vector_store %arg6[%c0_17, %c0_18], %19 {strides = array<i32>} : memref<1x512xf32, #tpu.memory_space<vmem>>, vector<1x512xf32>,
    } else {
    }
    %c0_i32_2 = arith.constant 0 : i32
    %5 = arith.cmpi eq, %arg1, %c0_i32_2 : i32
    %6 = arith.extui %5 : i1 to i32
    %c0_i32_3 = arith.constant 0 : i32
    %7 = arith.cmpi ne, %6, %c0_i32_3 : i32
    scf.if %7 {
      %cst_13 = arith.constant 0.000000e+00 : f32
      %17 = vector.broadcast %cst_13 : f32 to vector<16x512xf32>
      %c0_14 = arith.constant 0 : index
      %c0_15 = arith.constant 0 : index
      %18 = vector.load %arg7[%c0_14, %c0_15] : memref<16x512xf32, #tpu.memory_space<vmem>>, vector<16x512xf32>
      tpu.vector_store %arg7[%c0_14, %c0_15], %17 {strides = array<i32>} : memref<16x512xf32, #tpu.memory_space<vmem>>, vector<16x512xf32>,
    } else {
    }
    %c0 = arith.constant 0 : index
    %c0_4 = arith.constant 0 : index
    %8 = vector.load %arg7[%c0, %c0_4] : memref<16x512xf32, #tpu.memory_space<vmem>>, vector<16x512xf32>
    %c0_5 = arith.constant 0 : index
    %c0_6 = arith.constant 0 : index
    %9 = vector.load %arg2[%c0_5, %c0_6] : memref<16x128xbf16, #tpu.memory_space<vmem>>, vector<16x128xbf16>
    %c0_7 = arith.constant 0 : index
    %c0_8 = arith.constant 0 : index
    %10 = vector.load %arg3[%c0_7, %c0_8] : memref<128x512xbf16, #tpu.memory_space<vmem>>, vector<128x512xbf16>
    %cst = arith.constant dense<0.000000e+00> : vector<16x512xf32>
    %11 = tpu.matmul %9, %10, %cst {dimension_numbers = #tpu.dot_dimension_numbers<[1], [0], [0], [1], [0, 0, 1, 1], [], []>} : vector<16x128xbf16>, vector<128x512xbf16>, vector<16x512xf32> -> vector<16x512xf32>
    %12 = arith.addf %8, %11 : vector<16x512xf32>
    %c0_9 = arith.constant 0 : index
    %c0_10 = arith.constant 0 : index
    %13 = vector.load %arg7[%c0_9, %c0_10] : memref<16x512xf32, #tpu.memory_space<vmem>>, vector<16x512xf32>
    tpu.vector_store %arg7[%c0_9, %c0_10], %12 {strides = array<i32>} : memref<16x512xf32, #tpu.memory_space<vmem>>, vector<16x512xf32>,
    %c0_i32_11 = arith.constant 0 : i32
    %14 = arith.cmpi eq, %arg1, %c0_i32_11 : i32
    %15 = arith.extui %14 : i1 to i32
    %c0_i32_12 = arith.constant 0 : i32
    %16 = arith.cmpi ne, %15, %c0_i32_12 : i32
    scf.if %16 {
      %c0_13 = arith.constant 0 : index
      %c0_14 = arith.constant 0 : index
      %17 = vector.load %arg7[%c0_13, %c0_14] : memref<16x512xf32, #tpu.memory_space<vmem>>, vector<16x512xf32>
      %18 = arith.truncf %17 : vector<16x512xf32> to vector<16x512xbf16>
      %c0_15 = arith.constant 0 : index
      %c0_16 = arith.constant 0 : index
      %19 = vector.load %arg4[%c0_15, %c0_16] : memref<16x512xbf16, #tpu.memory_space<vmem>>, vector<16x512xbf16>
      tpu.vector_store %arg4[%c0_15, %c0_16], %18 {strides = array<i32>} : memref<16x512xbf16, #tpu.memory_space<vmem>>, vector<16x512xbf16>,
      %c0_17 = arith.constant 0 : index
      %c0_18 = arith.constant 0 : index
      %20 = vector.load %arg5[%c0_17, %c0_18] : memref<1x512xf32, #tpu.memory_space<vmem>>, vector<1x512xf32>
      %cst_19 = arith.constant dense<0.000000e+00> : vector<512xf32>
      %21 = vector.multi_reduction <add>, %17, %cst_19 [0] : vector<16x512xf32> to vector<512xf32>
      %22 = vector.shape_cast %21 : vector<512xf32> to vector<1x512xf32>
      %23 = arith.addf %20, %22 : vector<1x512xf32>
      %c0_20 = arith.constant 0 : index
      %c0_21 = arith.constant 0 : index
      %24 = vector.load %arg5[%c0_20, %c0_21] : memref<1x512xf32, #tpu.memory_space<vmem>>, vector<1x512xf32>
      tpu.vector_store %arg5[%c0_20, %c0_21], %23 {strides = array<i32>} : memref<1x512xf32, #tpu.memory_space<vmem>>, vector<1x512xf32>,
      %c0_22 = arith.constant 0 : index
      %c0_23 = arith.constant 0 : index
      %25 = vector.load %arg6[%c0_22, %c0_23] : memref<1x512xf32, #tpu.memory_space<vmem>>, vector<1x512xf32>
      %26 = arith.mulf %17, %17 : vector<16x512xf32>
      %cst_24 = arith.constant dense<0.000000e+00> : vector<512xf32>
      %27 = vector.multi_reduction <add>, %26, %cst_24 [0] : vector<16x512xf32> to vector<512xf32>
      %28 = vector.shape_cast %27 : vector<512xf32> to vector<1x512xf32>
      %29 = arith.addf %25, %28 : vector<1x512xf32>
      %c0_25 = arith.constant 0 : index
      %c0_26 = arith.constant 0 : index
      %30 = vector.load %arg6[%c0_25, %c0_26] : memref<1x512xf32, #tpu.memory_space<vmem>>, vector<1x512xf32>
      tpu.vector_store %arg6[%c0_25, %c0_26], %29 {strides = array<i32>} : memref<1x512xf32, #tpu.memory_space<vmem>>, vector<1x512xf32>,
    } else {
    }
    return
  }
  func.func @transform_0(%arg0: i32, %arg1: i32) -> (i32, i32) {
    %c0_i32 = arith.constant 0 : i32
    return %arg0, %arg1 : i32, i32
  }
  func.func @transform_1(%arg0: i32, %arg1: i32) -> (i32, i32) {
    %c0_i32 = arith.constant 0 : i32
    %c0_i32_0 = arith.constant 0 : i32
    return %arg1, %c0_i32 : i32, i32
  }
  func.func @transform_2(%arg0: i32, %arg1: i32) -> (i32, i32) {
    %c0_i32 = arith.constant 0 : i32
    %c0_i32_0 = arith.constant 0 : i32
    return %arg0, %c0_i32 : i32, i32
  }
  func.func @transform_3(%arg0: i32, %arg1: i32) -> (i32, i32) {
    %c0_i32 = arith.constant 0 : i32
    %c0_i32_0 = arith.constant 0 : i32
    %c0_i32_1 = arith.constant 0 : i32
    return %c0_i32, %c0_i32_0 : i32, i32
  }
  func.func @transform_4(%arg0: i32, %arg1: i32) -> (i32, i32) {
    %c0_i32 = arith.constant 0 : i32
    %c0_i32_0 = arith.constant 0 : i32
    %c0_i32_1 = arith.constant 0 : i32
    return %c0_i32, %c0_i32_0 : i32, i32
  }
}

</mosaic_0001>

<bundles_post_ra>
// kernel: tpu_custom_call.1
= control target key start
LH: loop header
LB: loop body
LE: loop exit
PB: predicated region body
PF: predicated region fallthrough
CT: control target
= control target key end

     0   :  { %10 = vsyncpa [#allocation4], 0  ;;  %s944_s0 = inlined_call_operand.hbm [shape: bf16[16,128], index: 0, kind: input, shape index: {}]   ;;  %s945_s1 = inlined_call_operand.hbm [shape: bf16[128,512], index: 1, kind: input, shape index: {}]   ;;  %s946_s2 = inlined_call_operand.hbm [shape: bf16[16,512], index: 2, kind: output, shape index: {0}]   ;;  %s947_s3 = inlined_call_operand.hbm [shape: f32[1,512], index: 3, kind: output, shape index: {1}]   ;;  %s948_s4 = inlined_call_operand.hbm [shape: f32[1,512], index: 4, kind: output, shape index: {2}]  }
   0x1   :  { %11 = vsyncpa [#allocation7], 0 }
   0x2   :  { %12 = vsyncpa [#allocation5], 0 }
   0x3   :  { %13 = vsyncpa [#allocation10], 0  ;;  %s814_s15 = smov [#allocation3]   ;;  %s696_s19 = scalar_lea.hbm %s944_s0, 128 }
   0x4   :  { %s19_s16 = sshll.u32 %s814_s15, 4  ;;  %p697_p0 = scmp.ne.s32.totalorder %s944_s0, %s696_s19  ;;  %s20_s16 = int_to_ptr.vmem [resolvable:$true] %s19_s16 }
   0x5   :  { %p700_p1 = scmp.lt.u32.totalorder %s696_s19, %s944_s0 }
   0x7   :  { %p702_p2 = pnand %p700_p1, %p697_p0 }
   0x9   :  { %705 = shalt.err (!%p702_p2)
}
   0xa   :  { %s706_s24 = scalar_lea.vmem %s20_s16, 128  ;;  %p711_p4 = scmp.lt.s32.totalorder %s20_s16, %s20_s16 }
   0xb   :  { %p707_p3 = scmp.ne.s32.totalorder %s20_s16, %s706_s24  ;;  %p712_p5 = scmp.lt.s32.totalorder %s706_s24, %s706_s24 }
   0xd   :  { %p713_p6 = por %p712_p5, %p711_p4 }
   0xf   :  { %p714_p7 = pnand %p713_p6, %p707_p3 }
  0x11   :  { %717 = shalt.err (!%p714_p7)
}
  0x12   :  { %s815_s25 = smov 64   ;;  %s816_s26 = smov 4  }
  0x13   :  { %25 = dma.hbm_to_vmem [thread:$0]  %s944_s0, 128, %s20_s16, [#allocation4], %s815_s25, %s815_s25, %s816_s26  }
  0x14   :  { %s817_s29 = smov [#allocation6]   ;;  %s718_s7 = scalar_lea.hbm %s945_s1, 4096 }
  0x15   :  { %s31_s30 = sshll.u32 %s817_s29, 4  ;;  %p719_p8 = scmp.ne.s32.totalorder %s945_s1, %s718_s7  ;;  %s32_s30 = int_to_ptr.vmem [resolvable:$true] %s31_s30 }
  0x16   :  { %p722_p9 = scmp.lt.u32.totalorder %s718_s7, %s945_s1 }
  0x18   :  { %p724_p10 = pnand %p722_p9, %p719_p8 }
  0x1a   :  { %727 = shalt.err (!%p724_p10)
}
  0x1b   :  { %s728_s12 = scalar_lea.vmem %s32_s30, 4096  ;;  %p733_p12 = scmp.lt.s32.totalorder %s32_s30, %s32_s30 }
  0x1c   :  { %p729_p11 = scmp.ne.s32.totalorder %s32_s30, %s728_s12  ;;  %p734_p13 = scmp.lt.s32.totalorder %s728_s12, %s728_s12 }
  0x1e   :  { %p735_p0 = por %p734_p13, %p733_p12 }
  0x20   :  { %p736_p1 = pnand %p735_p0, %p729_p11 }
  0x22   :  { %739 = shalt.err (!%p736_p1)
}
  0x23   :  { %s818_s0 = smov 256   ;;  %s819_s13 = smov 16  }
  0x24   :  { %37 = dma.hbm_to_vmem [thread:$0]  %s945_s1, 4096, %s32_s30, [#allocation7], %s818_s0, %s818_s0, %s819_s13  }
  0x25   :  { %806 = dma.done.wait [#allocation4], 128  }
  0x26   :  { %807 = vsyncadd [#allocation4], 4294967168 }
  0x27   :  { %808 = dma.done.wait [#allocation7], 4096  }
  0x28   :  { %809 = vsyncadd [#allocation7], 4294963200  ;;  %v820_v0 = vmov 0   ;;  %v647_v1 = vld [vmem:[#allocation6 + $0x4] ss:$16 sps:$4 sm:$0xff]   ;;  %v695_v33 = vld [vmem:[#allocation3] sm:$0xff]   ;;  %v51_v34 = vlaneseq }
  0x29   :  { %308 = vmatprep.mubr.bf16.mxu0 %v820_v0  ;;  %351 = vmatprep.mubr.bf16.mxu1 %v820_v0  ;;  %v649_v2 = vld [vmem:[#allocation6 + $0xc] ss:$16 sps:$4 sm:$0xff]   ;;  %v651_v3 = vld [vmem:[#allocation6] ss:$16 sps:$4 sm:$0xff]   ;;  %v652_v4 = vld [vmem:[#allocation6 + $0x8] ss:$16 sps:$4 sm:$0xff]  }
  0x2a   :  { %276 = vmatprep.subr.bf16.mxu0 %v647_v1  ;;  %319 = vmatprep.subr.bf16.mxu1 %v649_v2  ;;  %v653_v5 = vld [vmem:[#allocation6 + $0x24] ss:$16 sps:$4 sm:$0xff]   ;;  %v655_v6 = vld [vmem:[#allocation6 + $0x2c] ss:$16 sps:$4 sm:$0xff]   ;;  %v657_v7 = vld [vmem:[#allocation6 + $0x20] ss:$16 sps:$4 sm:$0xff]  }
  0x2b   :  { %277 = vmatpush1.bf16.msra.mxu0 %v651_v3  ;;  %320 = vmatpush1.bf16.msra.mxu1 %v652_v4  ;;  %v658_v8 = vld [vmem:[#allocation6 + $0x28] ss:$16 sps:$4 sm:$0xff]   ;;  %v659_v9 = vld [vmem:[#allocation6 + $0x44] ss:$16 sps:$4 sm:$0xff]   ;;  %v661_v10 = vld [vmem:[#allocation6 + $0x4c] ss:$16 sps:$4 sm:$0xff]  }
  0x2c   :  { %278 = vmatprep.subr.bf16.mxu0 %v653_v5  ;;  %321 = vmatprep.subr.bf16.mxu1 %v655_v6  ;;  %v663_v11 = vld [vmem:[#allocation6 + $0x40] ss:$16 sps:$4 sm:$0xff]   ;;  %v664_v12 = vld [vmem:[#allocation6 + $0x48] ss:$16 sps:$4 sm:$0xff]   ;;  %v665_v13 = vld [vmem:[#allocation6 + $0x64] ss:$16 sps:$4 sm:$0xff]  }
  0x2d   :  { %v667_v14 = vld [vmem:[#allocation6 + $0x6c] ss:$16 sps:$4 sm:$0xff]   ;;  %v669_v15 = vld [vmem:[#allocation6 + $0x60] ss:$16 sps:$4 sm:$0xff]   ;;  %v670_v16 = vld [vmem:[#allocation6 + $0x68] ss:$16 sps:$4 sm:$0xff]  }
  0x2e   :  { %v671_v17 = vld [vmem:[#allocation6 + $0x84] ss:$16 sps:$4 sm:$0xff]   ;;  %v673_v18 = vld [vmem:[#allocation6 + $0x8c] ss:$16 sps:$4 sm:$0xff]   ;;  %v675_v19 = vld [vmem:[#allocation6 + $0x80] ss:$16 sps:$4 sm:$0xff]  }
  0x2f   :  { %279 = vmatpush1.bf16.msra.mxu0 %v657_v7  ;;  %322 = vmatpush1.bf16.msra.mxu1 %v658_v8  ;;  %v676_v20 = vld [vmem:[#allocation6 + $0x88] ss:$16 sps:$4 sm:$0xff]   ;;  %v677_v21 = vld [vmem:[#allocation6 + $0xa4] ss:$16 sps:$4 sm:$0xff]   ;;  %v679_v22 = vld [vmem:[#allocation6 + $0xac] ss:$16 sps:$4 sm:$0xff]  }
  0x30   :  { %280 = vmatprep.subr.bf16.mxu0 %v659_v9  ;;  %323 = vmatprep.subr.bf16.mxu1 %v661_v10  ;;  %v681_v23 = vld [vmem:[#allocation6 + $0xa0] ss:$16 sps:$4 sm:$0xff]   ;;  %v682_v24 = vld [vmem:[#allocation6 + $0xa8] ss:$16 sps:$4 sm:$0xff]   ;;  %v683_v25 = vld [vmem:[#allocation6 + $0xc4] ss:$16 sps:$4 sm:$0xff]  }
  0x31   :  { %v685_v26 = vld [vmem:[#allocation6 + $0xcc] ss:$16 sps:$4 sm:$0xff]   ;;  %v687_v27 = vld [vmem:[#allocation6 + $0xc0] ss:$16 sps:$4 sm:$0xff]   ;;  %v688_v28 = vld [vmem:[#allocation6 + $0xc8] ss:$16 sps:$4 sm:$0xff]  }
  0x32   :  { %v689_v29 = vld [vmem:[#allocation6 + $0xe4] ss:$16 sps:$4 sm:$0xff]   ;;  %v691_v30 = vld [vmem:[#allocation6 + $0xec] ss:$16 sps:$4 sm:$0xff]   ;;  %v693_v31 = vld [vmem:[#allocation6 + $0xe0] ss:$16 sps:$4 sm:$0xff]  }
  0x33   :  { %281 = vmatpush1.bf16.msra.mxu0 %v663_v11  ;;  %324 = vmatpush1.bf16.msra.mxu1 %v664_v12  ;;  %v694_v32 = vld [vmem:[#allocation6 + $0xe8] ss:$16 sps:$4 sm:$0xff]   ;;  %vm878_vm0 = vcmp.lt.s32.totalorder %v51_v34, 512  ;;  %v821_v36 = vmov 0.0   ;;  %v822_v37 = vmov 1966171168  }
  0x34   :  { %282 = vmatprep.subr.bf16.mxu0 %v665_v13  ;;  %325 = vmatprep.subr.bf16.mxu1 %v667_v14  ;;  %55 = vst.msk [vmem:[#allocation9] sm:$0xf] %vm878_vm0, %v821_v36  ;;  %56 = vst.msk [vmem:[#allocation11] sm:$0xf] %vm878_vm0, %v821_v36  ;;  %v453_v38 = vunpack.c.l.s4 %v822_v37  ;;  %v456_v40 = vshrl.u32 %v51_v34, 7  ;;  %s823_s1 = smov [#allocation8]  }
  0x35   :  { %s554_s16 = sshll.u32 %s823_s1, 4  ;;  %s888_s16 = int_to_ptr.vmem [resolvable:$true] %s554_s16 }
  0x36   :  { %v454_v39 = vunpack.c.0.s8 %v453_v38  ;;  %s740_s17 = scalar_lea.vmem %s888_s16, 512  ;;  %p745_p3 = scmp.lt.s32.totalorder %s888_s16, %s888_s16 }
  0x37   :  { %283 = vmatpush1.bf16.msra.mxu0 %v669_v15  ;;  %326 = vmatpush1.bf16.msra.mxu1 %v670_v16  ;;  %p741_p2 = scmp.ne.s32.totalorder %s888_s16, %s740_s17  ;;  %p746_p4 = scmp.lt.s32.totalorder %s740_s17, %s740_s17 }
  0x38   :  { %284 = vmatprep.subr.bf16.mxu0 %v671_v17  ;;  %327 = vmatprep.subr.bf16.mxu1 %v673_v18  ;;  %v886_v47 = vsub.s32 %v454_v39, %v456_v40 }
  0x39   :  { %p747_p5 = por %p746_p4, %p745_p3 }
  0x3b   :  { %285 = vmatpush1.bf16.msra.mxu0 %v675_v19  ;;  %328 = vmatpush1.bf16.msra.mxu1 %v676_v20  ;;  %p748_p6 = pnand %p747_p5, %p741_p2 }
  0x3c   :  { %286 = vmatprep.subr.bf16.mxu0 %v677_v21  ;;  %329 = vmatprep.subr.bf16.mxu1 %v679_v22 }
  0x3f   :  { %287 = vmatpush1.bf16.msra.mxu0 %v681_v23  ;;  %330 = vmatpush1.bf16.msra.mxu1 %v682_v24 }
  0x40   :  { %288 = vmatprep.subr.bf16.mxu0 %v683_v25  ;;  %331 = vmatprep.subr.bf16.mxu1 %v685_v26 }
  0x43   :  { %289 = vmatpush1.bf16.msra.mxu0 %v687_v27  ;;  %332 = vmatpush1.bf16.msra.mxu1 %v688_v28 }
  0x44   :  { %290 = vmatprep.subr.bf16.mxu0 %v689_v29  ;;  %333 = vmatprep.subr.bf16.mxu1 %v691_v30 }
  0x47   :  { %291 = vmatpush1.bf16.msra.mxu0 %v693_v31  ;;  %334 = vmatpush1.bf16.msra.mxu1 %v694_v32 }
  0x4a   :  { %309 = vmatmul.mubr.bf16.vlgmr.msra.gmra.mrb[0].mxu0 %v695_v33  ;;  %352 = vmatmul.mubr.bf16.vlgmr.msra.gmra.mrb[0].mxu1 %v695_v33 }
 0x11d   :  { %v310_v41 = vpop.f32.mrb[0].mxu0  ;;  %v353_v42 = vpop.f32.mrb[0].mxu1 }
 0x11e   :  { %v482_v43 = vmul.f32 %v310_v41, %v310_v41  ;;  %v484_v44 = vmul.f32 %v353_v42, %v353_v42  ;;  %v312_v45 = vpop.f32.mrb[1].mxu0  ;;  %v355_v46 = vpop.f32.mrb[1].mxu1 }
 0x11f   :  { %v631_v48 = vpack.c.bf16 %v312_v45, %v310_v41  ;;  %v483_v49 = vmul.f32 %v312_v45, %v312_v45  ;;  %v632_v50 = vpack.c.bf16 %v355_v46, %v353_v42  ;;  %v485_v51 = vmul.f32 %v355_v46, %v355_v46  ;;  %v314_v52 = vpop.f32.mrb[2].mxu0  ;;  %v357_v53 = vpop.f32.mrb[2].mxu1 }
 0x120   :  { %v418_v54 = vadd.f32 %v314_v52, %v310_v41  ;;  %v486_v55 = vmul.f32 %v314_v52, %v314_v52  ;;  %v432_v56 = vadd.f32 %v357_v53, %v353_v42  ;;  %v488_v57 = vmul.f32 %v357_v53, %v357_v53  ;;  %v316_v58 = vpop.f32.mrb[3].mxu0  ;;  %v359_v59 = vpop.f32.mrb[3].mxu1 }
 0x121   :  { %413 = vst [vmem:[#allocation8] sm:$0xff] %v631_v48  ;;  %414 = vst [vmem:[#allocation8 + $0x8] sm:$0xff] %v632_v50  ;;  %v633_v60 = vpack.c.bf16 %v316_v58, %v314_v52  ;;  %v425_v61 = vadd.f32 %v316_v58, %v312_v45  ;;  %v487_v62 = vmul.f32 %v316_v58, %v316_v58 }
 0x122   :  { %v634_v63 = vpack.c.bf16 %v359_v59, %v357_v53  ;;  %v419_v0 = vrot.slane %v418_v54, 4  ;;  %v490_v1 = vadd.f32 %v486_v55, %v482_v43  ;;  %v433_v2 = vrot.slane %v432_v56, 4 }
 0x123   :  { %v504_v3 = vadd.f32 %v488_v57, %v484_v44  ;;  %415 = vst [vmem:[#allocation8 + $0x10] sm:$0xff] %v633_v60  ;;  %v426_v4 = vrot.slane %v425_v61, 4  ;;  %v497_v5 = vadd.f32 %v487_v62, %v483_v49  ;;  %v439_v6 = vadd.f32 %v359_v59, %v355_v46 }
 0x124   :  { %416 = vst [vmem:[#allocation8 + $0x18] sm:$0xff] %v634_v63  ;;  %v489_v7 = vmul.f32 %v359_v59, %v359_v59  ;;  %v420_v8 = vadd.f32 %v419_v0, %v418_v54  ;;  %v491_v9 = vrot.slane %v490_v1, 4  ;;  %v434_v10 = vadd.f32 %v433_v2, %v432_v56 }
 0x125   :  { %v505_v11 = vrot.slane %v504_v3, 4 }
 0x126   :  { %751 = shalt.err (!%p748_p6)
}
 0x127   :  { %s752_s20 = scalar_lea.hbm %s946_s2, 512 }
 0x128   :  { %p753_p7 = scmp.ne.s32.totalorder %s946_s2, %s752_s20  ;;  %p756_p8 = scmp.lt.u32.totalorder %s752_s20, %s946_s2 }
 0x12a   :  { %p758_p9 = pnand %p756_p8, %p753_p7 }
 0x12c   :  { %761 = shalt.err (!%p758_p9)
}
 0x12d   :  { %560 = dma.vmem_to_hbm [thread:$0]  %s888_s16, 512, %s946_s2, [#allocation5], %s818_s0, %s818_s0, %s819_s13   ;;  %v427_v12 = vadd.f32 %v426_v4, %v425_v61  ;;  %v498_v13 = vrot.slane %v497_v5, 4  ;;  %v440_v14 = vrot.slane %v439_v6, 4  ;;  %v511_v15 = vadd.f32 %v489_v7, %v485_v51  ;;  %v481_v4 = vld [vmem:[#allocation11] sm:$0xf] }
 0x12e   :  { %v421_v16 = vrot.slane %v420_v8, 2  ;;  %v492_v17 = vadd.f32 %v491_v9, %v490_v1  ;;  %v435_v18 = vrot.slane %v434_v10, 2  ;;  %v506_v19 = vadd.f32 %v505_v11, %v504_v3  ;;  %v417_v1 = vld [vmem:[#allocation9] sm:$0xf]  ;;  %s824_s2 = smov [#allocation9]   ;;  %s825_s28 = smov [#allocation11]  }
 0x12f   :  { %v428_v20 = vrot.slane %v427_v12, 2  ;;  %v499_v21 = vadd.f32 %v498_v13, %v497_v5  ;;  %v441_v22 = vadd.f32 %v440_v14, %v439_v6  ;;  %v512_v23 = vrot.slane %v511_v15, 4  ;;  %s567_s27 = sshll.u32 %s824_s2, 4  ;;  %s577_s29 = sshll.u32 %s825_s28, 4  ;;  %s568_s27 = int_to_ptr.vmem [resolvable:$true] %s567_s27  ;;  %s578_s29 = int_to_ptr.vmem [resolvable:$true] %s577_s29 }
 0x130   :  { %v422_v24 = vadd.f32 %v421_v16, %v420_v8  ;;  %v493_v25 = vrot.slane %v492_v17, 2  ;;  %v436_v26 = vadd.f32 %v435_v18, %v434_v10  ;;  %v507_v27 = vrot.slane %v506_v19, 2  ;;  %s762_s30 = scalar_lea.vmem %s568_s27, 64  ;;  %p767_p11 = scmp.lt.s32.totalorder %s568_s27, %s568_s27 }
 0x131   :  { %v429_v28 = vadd.f32 %v428_v20, %v427_v12  ;;  %v500_v29 = vrot.slane %v499_v21, 2  ;;  %v442_v30 = vrot.slane %v441_v22, 2  ;;  %v513_v31 = vadd.f32 %v512_v23, %v511_v15  ;;  %p763_p10 = scmp.ne.s32.totalorder %s568_s27, %s762_s30  ;;  %p768_p12 = scmp.lt.s32.totalorder %s762_s30, %s762_s30 }
 0x132   :  { %v423_v32 = vrot.slane %v422_v24, 1  ;;  %v494_v33 = vadd.f32 %v493_v25, %v492_v17  ;;  %v437_v34 = vrot.slane %v436_v26, 1  ;;  %v508_v36 = vadd.f32 %v507_v27, %v506_v19 }
 0x133   :  { %v430_v37 = vrot.slane %v429_v28, 1  ;;  %v501_v38 = vadd.f32 %v500_v29, %v499_v21  ;;  %v443_v39 = vadd.f32 %v442_v30, %v441_v22  ;;  %v514_v40 = vrot.slane %v513_v31, 2  ;;  %p769_p13 = por %p768_p12, %p767_p11 }
 0x134   :  { %v424_v41 = vadd.f32 %v423_v32, %v422_v24  ;;  %v495_v42 = vrot.slane %v494_v33, 1  ;;  %v438_v43 = vadd.f32 %v437_v34, %v436_v26  ;;  %v509_v44 = vrot.slane %v508_v36, 1 }
 0x135   :  { %v431_v45 = vadd.f32 %v430_v37, %v429_v28  ;;  %v502_v46 = vrot.slane %v501_v38, 1  ;;  %v444_v48 = vrot.slane %v443_v39, 1  ;;  %v515_v49 = vadd.f32 %v514_v40, %v513_v31  ;;  %p770_p0 = pnand %p769_p13, %p763_p10 }
 0x136   :  { %v496_v50 = vadd.f32 %v495_v42, %v494_v33  ;;  %v510_v51 = vadd.f32 %v509_v44, %v508_v36 }
 0x137   :  { %v450_v52 = vcombine.low %v424_v41, %v431_v45  ;;  %v503_v53 = vadd.f32 %v502_v46, %v501_v38  ;;  %v445_v54 = vadd.f32 %v444_v48, %v443_v39  ;;  %v516_v55 = vrot.slane %v515_v49, 1 }
 0x139   :  { %v522_v56 = vcombine.low %v496_v50, %v503_v53  ;;  %v451_v57 = vcombine.low %v438_v43, %v445_v54  ;;  %v517_v58 = vadd.f32 %v516_v55, %v515_v49  ;;  %v458_v59 = vrot.slane %v450_v52, %v886_v47 }
 0x13b   :  { %v523_v60 = vcombine.low %v510_v51, %v517_v58  ;;  %v465_v61 = vrot.slane %v451_v57, %v886_v47  ;;  %v530_v62 = vrot.slane %v522_v56, %v886_v47 }
 0x13d   :  { %v466_v63 = vcombine.low %v458_v59, %v465_v61  ;;  %v537_v0 = vrot.slane %v523_v60, %v886_v47 }
 0x13f   :  { %v473_v2 = vrot.slane %v466_v63, %v886_v47  ;;  %v538_v3 = vcombine.low %v530_v62, %v537_v0 }
 0x141   :  { %v475_v5 = vadd.f32 %v473_v2, %v417_v1  ;;  %v545_v6 = vrot.slane %v538_v3, %v886_v47 }
 0x143   :  { %480 = vst.msk [vmem:[#allocation9] sm:$0xf] %vm878_vm0, %v475_v5  ;;  %v547_v7 = vadd.f32 %v545_v6, %v481_v4 }
 0x144   :  { %773 = shalt.err (!%p770_p0)
}
 0x145   :  { %s774_s7 = scalar_lea.hbm %s947_s3, 64 }
 0x146   :  { %p775_p1 = scmp.ne.s32.totalorder %s947_s3, %s774_s7  ;;  %p778_p2 = scmp.lt.u32.totalorder %s774_s7, %s947_s3 }
 0x148   :  { %p780_p3 = pnand %p778_p2, %p775_p1 }
 0x14a   :  { %783 = shalt.err (!%p780_p3)
}
 0x14b   :  { %570 = dma.vmem_to_hbm [thread:$0]  %s568_s27, 64, %s947_s3, [#allocation10]   ;;  %548 = vst.msk [vmem:[#allocation11] sm:$0xf] %vm878_vm0, %v547_v7 }
 0x14c   :  { %s784_s13 = scalar_lea.vmem %s578_s29, 64  ;;  %p789_p5 = scmp.lt.s32.totalorder %s578_s29, %s578_s29 }
 0x14d   :  { %p785_p4 = scmp.ne.s32.totalorder %s578_s29, %s784_s13  ;;  %p790_p6 = scmp.lt.s32.totalorder %s784_s13, %s784_s13 }
 0x14f   :  { %p791_p7 = por %p790_p6, %p789_p5 }
 0x151   :  { %p792_p8 = pnand %p791_p7, %p785_p4 }
 0x153   :  { %795 = shalt.err (!%p792_p8)
}
 0x154   :  { %s796_s1 = scalar_lea.hbm %s948_s4, 64 }
 0x155   :  { %p797_p9 = scmp.ne.s32.totalorder %s948_s4, %s796_s1  ;;  %p800_p10 = scmp.lt.u32.totalorder %s796_s1, %s948_s4 }
 0x157   :  { %p802_p11 = pnand %p800_p10, %p797_p9 }
 0x159   :  { %805 = shalt.err (!%p802_p11)
}
 0x15a   :  { %580 = dma.vmem_to_hbm [thread:$0]  %s578_s29, 64, %s948_s4, [#allocation10]  }
 0x15b   :  { %810 = dma.done.wait [#allocation5], 512  }
 0x15c   :  { %811 = vsyncadd [#allocation5], 4294966784 }
 0x15d   :  { %812 = dma.done.wait [#allocation10], 128  }
 0x15e   :  { %813 = vsyncadd [#allocation10], 4294967168 }
 0x15f   :  { %590 = vsyncpa [#allocation4], 1 }
 0x160   :  { %591 = vsyncpa [#allocation7], 1 }
 0x161   :  { %592 = vsyncpa [#allocation5], 1 }
 0x162   :  { %593 = vsyncpa [#allocation10], 1 }

</bundles_post_ra>
